<compile_context>
chip_gen: v6e
topology: v6e:2x2x1
jax: 0.10.0
libtpu: 0.0.40
codegen_flags: <defaults>
</compile_context>

<pallas_src>
import math
from functools import partial

import jax
import jax.numpy as jnp
from jax.experimental import pallas as pl
from jax.experimental.pallas import tpu as pltpu


# ----------------------------------------------------------------------------
# Fused multi-head attention kernel: ONE invocation for the whole batch.
# ----------------------------------------------------------------------------
def mha_kernel(*refs, num_heads, has_mask, causal, compute_dtype):
    if has_mask:
        q_ref, k_ref, v_ref, mask_ref, w_ref, b_ref, out_ref = refs
    else:
        q_ref, k_ref, v_ref, w_ref, b_ref, out_ref = refs
        mask_ref = None

    H = num_heads
    cd = compute_dtype
    B, T, D = q_ref.shape
    S = k_ref.shape[1]
    dk = D // H

    W = w_ref[...]                       # (D, 4D) f32; [Wq*scale | Wk | Wv | Wo]
    bq = b_ref[0:1, :]                   # (1, D); 1/sqrt(dk) already folded
    bk = b_ref[1:2, :]
    bv = b_ref[2:3, :]
    bo = b_ref[3:4, :]

    x2 = q_ref[...].reshape(B * T, D).astype(cd)
    k2 = k_ref[...].reshape(B * S, D).astype(cd)
    v2 = v_ref[...].reshape(B * S, D).astype(cd)

    # Lane-dense projections: one 2-D (B*L, D) @ (D, D) matmul each (f32 accumulation).
    q = jnp.dot(x2, W[:, 0:D].astype(cd), preferred_element_type=jnp.float32) + bq
    k = jnp.dot(k2, W[:, D:2 * D].astype(cd), preferred_element_type=jnp.float32) + bk
    v = jnp.dot(v2, W[:, 2 * D:3 * D].astype(cd), preferred_element_type=jnp.float32) + bv

    q3 = q.reshape(B, T, D)
    k3 = k.reshape(B, S, D)
    v3 = v.reshape(B, S, D)

    # Mask: built in-kernel for the static causal case (no HBM stream), otherwise the
    # streamed compact integer mask (B, 1|T, S) is applied with jnp.where.
    if causal:
        row = jax.lax.broadcasted_iota(jnp.int32, (T, S), 0)
        col = jax.lax.broadcasted_iota(jnp.int32, (T, S), 1)
        keep = (row >= col)[None]                    # (1, T, S), broadcasts over B
    elif has_mask:
        keep = mask_ref[...] != 0                    # (B, 1|T, S), broadcasts over rows
    else:
        keep = None
    neg = jnp.float32(-1e9)

    # Per-head attention (static unroll; H is tiny).  Each einsum is a clean 3-D
    # dot_general with a single leading batch dim; the dk-deep contraction is inherent
    # to per-head attention.  Softmax stats stay f32.
    heads = []
    for h in range(H):
        lo = h * dk
        qh = q3[:, :, lo:lo + dk]                    # (B, T, dk)
        kh = k3[:, :, lo:lo + dk]                    # (B, S, dk)
        vh = v3[:, :, lo:lo + dk]                    # (B, S, dk)

        s = jnp.einsum('btd,bsd->bts', qh.astype(cd), kh.astype(cd),
                       preferred_element_type=jnp.float32)            # (B, T, S)
        if keep is not None:
            s = jnp.where(keep, s, neg)              # masked_fill(mask == 0, -1e9)

        s = s - jnp.max(s, axis=-1, keepdims=True)
        p = jnp.exp(s)
        p = p * pl.reciprocal(jnp.sum(p, axis=-1, keepdims=True), approx=False)
        # TODO(synk): nn.Dropout(p_attn) is train-mode only; eval forward is identity.

        heads.append(jnp.einsum('bts,bsd->btd', p.astype(cd), vh.astype(cd),
                                preferred_element_type=jnp.float32))   # (B, T, dk)

    # concat_heads + Linear_o as ONE D-deep lane-dense matmul (head-sum folded into Wo).
    o2 = jnp.concatenate(heads, axis=-1).reshape(B * T, D)
    y = jnp.dot(o2.astype(cd), W[:, 3 * D:4 * D].astype(cd),
                preferred_element_type=jnp.float32) + bo
    out_ref[...] = y.reshape(B, T, D).astype(out_ref.dtype)


# ----------------------------------------------------------------------------
# Wrapper: ONE pallas_call, no grid, everything resident in VMEM for the call.
# ----------------------------------------------------------------------------
def multi_headed_attention(params, query, key, value, mask=None, *,
                           num_heads, causal=False, compute_dtype=jnp.float32):
    B, T, D = query.shape
    H = num_heads
    assert D % H == 0
    assert not (causal and mask is not None), "pass either causal=True or an explicit mask"
    dk = D // H
    scale = 1.0 / math.sqrt(dk)

    # One-time layout plumbing outside the kernel: two lane-dense parameter slabs,
    # 1/sqrt(dk) folded into the Q projection.
    w_slab = jnp.concatenate(
        [params["wq"] * scale, params["wk"], params["wv"], params["wo"]],
        axis=1).astype(jnp.float32)                                       # (D, 4D)
    b_slab = jnp.stack(
        [params["bq"] * scale, params["bk"], params["bv"], params["bo"]],
        axis=0).astype(jnp.float32)                                       # (4, D)

    vmem = pltpu.MemorySpace.VMEM
    in_specs = [pl.BlockSpec(memory_space=vmem),     # query
                pl.BlockSpec(memory_space=vmem),     # key
                pl.BlockSpec(memory_space=vmem)]     # value
    args = [query, key, value]
    if mask is not None:
        in_specs.append(pl.BlockSpec(memory_space=vmem))
        args.append(mask.astype(jnp.int32))          # compact mask, no f32 bias blow-up
    in_specs += [pl.BlockSpec(memory_space=vmem),    # packed weights (D, 4D)
                 pl.BlockSpec(memory_space=vmem)]    # packed biases  (4, D)
    args += [w_slab, b_slab]

    kernel = partial(mha_kernel, num_heads=H, has_mask=mask is not None,
                     causal=causal, compute_dtype=compute_dtype)
    return pl.pallas_call(
        kernel,
        out_shape=jax.ShapeDtypeStruct((B, T, D), query.dtype),
        in_specs=in_specs,
        out_specs=pl.BlockSpec(memory_space=vmem),
    )(*args)


# ----------------------------------------------------------------------------
# Pure-JAX reference (mirrors the PyTorch module) for correctness checks.
# ----------------------------------------------------------------------------
def mha_reference(params, query, key, value, mask=None, *, num_heads):
    B, T, D = query.shape
    H = num_heads
    dk = D // H
    q = query @ params["wq"] + params["bq"]
    k = key @ params["wk"] + params["bk"]
    v = value @ params["wv"] + params["bv"]
    split = lambda t: t.reshape(B, -1, H, dk).transpose(0, 2, 1, 3)
    qh, kh, vh = split(q), split(k), split(v)
    s = jnp.einsum('bhtd,bhsd->bhts', qh, kh) / math.sqrt(dk)
    if mask is not None:
        s = jnp.where(mask[:, None] != 0, s, -1e9)
    p = jax.nn.softmax(s, axis=-1)
    o = jnp.einsum('bhts,bhsd->bhtd', p, vh)
    o = o.transpose(0, 2, 1, 3).reshape(B, -1, D)
    return o @ params["wo"] + params["bo"]


# ----------------------------------------------------------------------------
# Parameter construction (deterministic, synthetic; nn.Linear-style init,
# weights stored (in, out) so y = x @ W + b).
# ----------------------------------------------------------------------------
def make_mha_params(key, d_model):
    lim = 1.0 / math.sqrt(d_model)

    def linear(k):
        kw, kb = jax.random.split(k)
        w = jax.random.uniform(kw, (d_model, d_model), jnp.float32, -lim, lim)
        b = jax.random.uniform(kb, (d_model,), jnp.float32, -lim, lim)
        return w, b

    ks = jax.random.split(key, 4)
    wq, bq = linear(ks[0])
    wk, bk = linear(ks[1])
    wv, bv = linear(ks[2])
    wo, bo = linear(ks[3])
    return dict(wq=wq, bq=bq, wk=wk, bk=bk, wv=wv, bv=bv, wo=wo, bo=bo)


if __name__ == "__main__":
    B, T, D, H = 2, 8, 32, 4
    S_CROSS = 16

    root = jax.random.PRNGKey(0)
    kp, kx, km = jax.random.split(root, 3)
    params = make_mha_params(kp, D)

    x = jax.random.normal(kx, (B, T, D), jnp.float32)
    memory = jax.random.normal(km, (B, S_CROSS, D), jnp.float32)

    # (1) causal self-attention: mask built in-kernel from iota (no streamed mask tensor).
    out_self = multi_headed_attention(params, x, x, x, causal=True, num_heads=H)

    # (2) cross-attention, mask=None (mask-free kernel path).
    out_cross = multi_headed_attention(params, x, memory, memory, None, num_heads=H)

    # (3) self-attention with an explicit (B, 1, T) padding mask (streamed compact-int path).
    pad_mask = jnp.ones((B, 1, T), jnp.int32).at[1, 0, T - 2:].set(0)
    out_pad = multi_headed_attention(params, x, x, x, pad_mask, num_heads=H)

    out_self, out_cross, out_pad = jax.block_until_ready((out_self, out_cross, out_pad))

    # Correctness against the pure-JAX reference of the PyTorch module.
    causal_mask = jnp.broadcast_to(jnp.tril(jnp.ones((T, T), jnp.int32)), (B, T, T))
    ref_self = mha_reference(params, x, x, x, causal_mask, num_heads=H)
    ref_cross = mha_reference(params, x, memory, memory, None, num_heads=H)
    ref_pad = mha_reference(params, x, x, x, pad_mask, num_heads=H)

    assert out_self.shape == (B, T, D) and out_cross.shape == (B, T, D)
    assert bool(jnp.all(jnp.isfinite(out_self)))
    assert bool(jnp.allclose(out_self, ref_self, atol=1e-4, rtol=1e-4))
    assert bool(jnp.allclose(out_cross, ref_cross, atol=1e-4, rtol=1e-4))
    assert bool(jnp.allclose(out_pad, ref_pad, atol=1e-4, rtol=1e-4))
    print("KERNEL_OK")
</pallas_src>

<mosaic_0001>
module attributes {stable_mosaic.version = 11 : i64} {
  func.func @mha_kernel(%arg0: memref<2x8x32xf32, #tpu.memory_space<vmem>>, %arg1: memref<2x8x32xf32, #tpu.memory_space<vmem>>, %arg2: memref<2x8x32xf32, #tpu.memory_space<vmem>>, %arg3: memref<32x128xf32, #tpu.memory_space<vmem>>, %arg4: memref<4x32xf32, #tpu.memory_space<vmem>>, %arg5: memref<2x8x32xf32, #tpu.memory_space<vmem>>) attributes {dimension_semantics = [], scalar_prefetch = 0 : i64, scratch_operands = 0 : i64, tpu.core_type = #tpu.core_type<tc>} {
    %c0 = arith.constant 0 : index
    %c0_0 = arith.constant 0 : index
    %0 = vector.load %arg3[%c0, %c0_0] : memref<32x128xf32, #tpu.memory_space<vmem>>, vector<32x128xf32>
    %c0_1 = arith.constant 0 : index
    %c0_2 = arith.constant 0 : index
    %1 = vector.load %arg4[%c0_1, %c0_2] : memref<4x32xf32, #tpu.memory_space<vmem>>, vector<1x32xf32>
    %c1 = arith.constant 1 : index
    %c0_3 = arith.constant 0 : index
    %2 = vector.load %arg4[%c1, %c0_3] : memref<4x32xf32, #tpu.memory_space<vmem>>, vector<1x32xf32>
    %c2 = arith.constant 2 : index
    %c0_4 = arith.constant 0 : index
    %3 = vector.load %arg4[%c2, %c0_4] : memref<4x32xf32, #tpu.memory_space<vmem>>, vector<1x32xf32>
    %c3 = arith.constant 3 : index
    %c0_5 = arith.constant 0 : index
    %4 = vector.load %arg4[%c3, %c0_5] : memref<4x32xf32, #tpu.memory_space<vmem>>, vector<1x32xf32>
    %c0_6 = arith.constant 0 : index
    %c0_7 = arith.constant 0 : index
    %c0_8 = arith.constant 0 : index
    %5 = vector.load %arg0[%c0_6, %c0_7, %c0_8] : memref<2x8x32xf32, #tpu.memory_space<vmem>>, vector<2x8x32xf32>
    %6 = vector.shape_cast %5 : vector<2x8x32xf32> to vector<16x32xf32>
    %c0_9 = arith.constant 0 : index
    %c0_10 = arith.constant 0 : index
    %c0_11 = arith.constant 0 : index
    %7 = vector.load %arg1[%c0_9, %c0_10, %c0_11] : memref<2x8x32xf32, #tpu.memory_space<vmem>>, vector<2x8x32xf32>
    %8 = vector.shape_cast %7 : vector<2x8x32xf32> to vector<16x32xf32>
    %c0_12 = arith.constant 0 : index
    %c0_13 = arith.constant 0 : index
    %c0_14 = arith.constant 0 : index
    %9 = vector.load %arg2[%c0_12, %c0_13, %c0_14] : memref<2x8x32xf32, #tpu.memory_space<vmem>>, vector<2x8x32xf32>
    %10 = vector.shape_cast %9 : vector<2x8x32xf32> to vector<16x32xf32>
    %11 = vector.extract_strided_slice %0 {offsets = [0, 0], sizes = [32, 32], strides = [1, 1]} : vector<32x128xf32> to vector<32x32xf32>
    %cst = arith.constant dense<0.000000e+00> : vector<16x32xf32>
    %12 = tpu.matmul %6, %11, %cst {dimension_numbers = #tpu.dot_dimension_numbers<[1], [0], [0], [1], [0, 0, 1, 1], [], []>} : vector<16x32xf32>, vector<32x32xf32>, vector<16x32xf32> -> vector<16x32xf32>
    %13 = vector.broadcast %1 : vector<1x32xf32> to vector<16x32xf32>
    %14 = arith.addf %12, %13 : vector<16x32xf32>
    %15 = vector.extract_strided_slice %0 {offsets = [0, 32], sizes = [32, 32], strides = [1, 1]} : vector<32x128xf32> to vector<32x32xf32>
    %cst_15 = arith.constant dense<0.000000e+00> : vector<16x32xf32>
    %16 = tpu.matmul %8, %15, %cst_15 {dimension_numbers = #tpu.dot_dimension_numbers<[1], [0], [0], [1], [0, 0, 1, 1], [], []>} : vector<16x32xf32>, vector<32x32xf32>, vector<16x32xf32> -> vector<16x32xf32>
    %17 = vector.broadcast %2 : vector<1x32xf32> to vector<16x32xf32>
    %18 = arith.addf %16, %17 : vector<16x32xf32>
    %19 = vector.extract_strided_slice %0 {offsets = [0, 64], sizes = [32, 32], strides = [1, 1]} : vector<32x128xf32> to vector<32x32xf32>
    %cst_16 = arith.constant dense<0.000000e+00> : vector<16x32xf32>
    %20 = tpu.matmul %10, %19, %cst_16 {dimension_numbers = #tpu.dot_dimension_numbers<[1], [0], [0], [1], [0, 0, 1, 1], [], []>} : vector<16x32xf32>, vector<32x32xf32>, vector<16x32xf32> -> vector<16x32xf32>
    %21 = vector.broadcast %3 : vector<1x32xf32> to vector<16x32xf32>
    %22 = arith.addf %20, %21 : vector<16x32xf32>
    %23 = vector.shape_cast %14 : vector<16x32xf32> to vector<2x8x32xf32>
    %24 = vector.shape_cast %18 : vector<16x32xf32> to vector<2x8x32xf32>
    %25 = vector.shape_cast %22 : vector<16x32xf32> to vector<2x8x32xf32>
    %26 = tpu.iota {dimensions = array<i32: 0>} : vector<8x8xi32>
    %27 = tpu.iota {dimensions = array<i32: 1>} : vector<8x8xi32>
    %28 = arith.cmpi sge, %26, %27 : vector<8x8xi32>
    %29 = vector.shape_cast %28 : vector<8x8xi1> to vector<1x8x8xi1>
    %30 = vector.extract_strided_slice %23 {offsets = [0, 0, 0], sizes = [2, 8, 8], strides = [1, 1, 1]} : vector<2x8x32xf32> to vector<2x8x8xf32>
    %31 = vector.extract_strided_slice %24 {offsets = [0, 0, 0], sizes = [2, 8, 8], strides = [1, 1, 1]} : vector<2x8x32xf32> to vector<2x8x8xf32>
    %32 = vector.extract_strided_slice %25 {offsets = [0, 0, 0], sizes = [2, 8, 8], strides = [1, 1, 1]} : vector<2x8x32xf32> to vector<2x8x8xf32>
    "tpu.trace_start"() <{level = 10 : i32, message = "btd,bsd->bts"}> : () -> ()
    %cst_17 = arith.constant dense<0.000000e+00> : vector<2x8x8xf32>
    %33 = tpu.matmul %30, %31, %cst_17 {dimension_numbers = #tpu.dot_dimension_numbers<[2], [2], [1], [1], [0, 0, 0, 1, 1, 1], [0], [0]>} : vector<2x8x8xf32>, vector<2x8x8xf32>, vector<2x8x8xf32> -> vector<2x8x8xf32>
    %cst_18 = arith.constant -1.000000e+09 : f32
    "tpu.trace_stop"() : () -> ()
    %34 = vector.shape_cast %29 : vector<1x8x8xi1> to vector<1x8x8xi1>
    %35 = vector.broadcast %34 : vector<1x8x8xi1> to vector<2x8x8xi1>
    %36 = vector.broadcast %cst_18 : f32 to vector<2x8x8xf32>
    %37 = arith.select %35, %33, %36 : vector<2x8x8xi1>, vector<2x8x8xf32>
    %cst_19 = arith.constant dense<0xFF800000> : vector<2x8xf32>
    %38 = vector.multi_reduction <maximumf>, %37, %cst_19 [2] : vector<2x8x8xf32> to vector<2x8xf32>
    %39 = vector.shape_cast %38 : vector<2x8xf32> to vector<2x8x1xf32>
    %40 = vector.broadcast %39 : vector<2x8x1xf32> to vector<2x8x8xf32>
    %41 = arith.subf %37, %40 : vector<2x8x8xf32>
    %42 = math.exp %41 : vector<2x8x8xf32>
    %cst_20 = arith.constant dense<0.000000e+00> : vector<2x8xf32>
    %43 = vector.multi_reduction <add>, %42, %cst_20 [2] : vector<2x8x8xf32> to vector<2x8xf32>
    %44 = vector.shape_cast %43 : vector<2x8xf32> to vector<2x8x1xf32>
    %45 = tpu.reciprocal %44 : vector<2x8x1xf32> -> vector<2x8x1xf32>
    %46 = vector.broadcast %45 : vector<2x8x1xf32> to vector<2x8x8xf32>
    %47 = arith.mulf %42, %46 : vector<2x8x8xf32>
    "tpu.trace_start"() <{level = 10 : i32, message = "bts,bsd->btd"}> : () -> ()
    %cst_21 = arith.constant dense<0.000000e+00> : vector<2x8x8xf32>
    %48 = tpu.matmul %47, %32, %cst_21 {dimension_numbers = #tpu.dot_dimension_numbers<[2], [1], [1], [2], [0, 0, 0, 1, 1, 2], [0], [0]>} : vector<2x8x8xf32>, vector<2x8x8xf32>, vector<2x8x8xf32> -> vector<2x8x8xf32>
    "tpu.trace_stop"() : () -> ()
    %49 = vector.extract_strided_slice %23 {offsets = [0, 0, 8], sizes = [2, 8, 8], strides = [1, 1, 1]} : vector<2x8x32xf32> to vector<2x8x8xf32>
    %50 = vector.extract_strided_slice %24 {offsets = [0, 0, 8], sizes = [2, 8, 8], strides = [1, 1, 1]} : vector<2x8x32xf32> to vector<2x8x8xf32>
    %51 = vector.extract_strided_slice %25 {offsets = [0, 0, 8], sizes = [2, 8, 8], strides = [1, 1, 1]} : vector<2x8x32xf32> to vector<2x8x8xf32>
    "tpu.trace_start"() <{level = 10 : i32, message = "btd,bsd->bts"}> : () -> ()
    %cst_22 = arith.constant dense<0.000000e+00> : vector<2x8x8xf32>
    %52 = tpu.matmul %49, %50, %cst_22 {dimension_numbers = #tpu.dot_dimension_numbers<[2], [2], [1], [1], [0, 0, 0, 1, 1, 1], [0], [0]>} : vector<2x8x8xf32>, vector<2x8x8xf32>, vector<2x8x8xf32> -> vector<2x8x8xf32>
    %cst_23 = arith.constant -1.000000e+09 : f32
    "tpu.trace_stop"() : () -> ()
    %53 = vector.shape_cast %29 : vector<1x8x8xi1> to vector<1x8x8xi1>
    %54 = vector.broadcast %53 : vector<1x8x8xi1> to vector<2x8x8xi1>
    %55 = vector.broadcast %cst_23 : f32 to vector<2x8x8xf32>
    %56 = arith.select %54, %52, %55 : vector<2x8x8xi1>, vector<2x8x8xf32>
    %cst_24 = arith.constant dense<0xFF800000> : vector<2x8xf32>
    %57 = vector.multi_reduction <maximumf>, %56, %cst_24 [2] : vector<2x8x8xf32> to vector<2x8xf32>
    %58 = vector.shape_cast %57 : vector<2x8xf32> to vector<2x8x1xf32>
    %59 = vector.broadcast %58 : vector<2x8x1xf32> to vector<2x8x8xf32>
    %60 = arith.subf %56, %59 : vector<2x8x8xf32>
    %61 = math.exp %60 : vector<2x8x8xf32>
    %cst_25 = arith.constant dense<0.000000e+00> : vector<2x8xf32>
    %62 = vector.multi_reduction <add>, %61, %cst_25 [2] : vector<2x8x8xf32> to vector<2x8xf32>
    %63 = vector.shape_cast %62 : vector<2x8xf32> to vector<2x8x1xf32>
    %64 = tpu.reciprocal %63 : vector<2x8x1xf32> -> vector<2x8x1xf32>
    %65 = vector.broadcast %64 : vector<2x8x1xf32> to vector<2x8x8xf32>
    %66 = arith.mulf %61, %65 : vector<2x8x8xf32>
    "tpu.trace_start"() <{level = 10 : i32, message = "bts,bsd->btd"}> : () -> ()
    %cst_26 = arith.constant dense<0.000000e+00> : vector<2x8x8xf32>
    %67 = tpu.matmul %66, %51, %cst_26 {dimension_numbers = #tpu.dot_dimension_numbers<[2], [1], [1], [2], [0, 0, 0, 1, 1, 2], [0], [0]>} : vector<2x8x8xf32>, vector<2x8x8xf32>, vector<2x8x8xf32> -> vector<2x8x8xf32>
    "tpu.trace_stop"() : () -> ()
    %68 = vector.extract_strided_slice %23 {offsets = [0, 0, 16], sizes = [2, 8, 8], strides = [1, 1, 1]} : vector<2x8x32xf32> to vector<2x8x8xf32>
    %69 = vector.extract_strided_slice %24 {offsets = [0, 0, 16], sizes = [2, 8, 8], strides = [1, 1, 1]} : vector<2x8x32xf32> to vector<2x8x8xf32>
    %70 = vector.extract_strided_slice %25 {offsets = [0, 0, 16], sizes = [2, 8, 8], strides = [1, 1, 1]} : vector<2x8x32xf32> to vector<2x8x8xf32>
    "tpu.trace_start"() <{level = 10 : i32, message = "btd,bsd->bts"}> : () -> ()
    %cst_27 = arith.constant dense<0.000000e+00> : vector<2x8x8xf32>
    %71 = tpu.matmul %68, %69, %cst_27 {dimension_numbers = #tpu.dot_dimension_numbers<[2], [2], [1], [1], [0, 0, 0, 1, 1, 1], [0], [0]>} : vector<2x8x8xf32>, vector<2x8x8xf32>, vector<2x8x8xf32> -> vector<2x8x8xf32>
    %cst_28 = arith.constant -1.000000e+09 : f32
    "tpu.trace_stop"() : () -> ()
    %72 = vector.shape_cast %29 : vector<1x8x8xi1> to vector<1x8x8xi1>
    %73 = vector.broadcast %72 : vector<1x8x8xi1> to vector<2x8x8xi1>
    %74 = vector.broadcast %cst_28 : f32 to vector<2x8x8xf32>
    %75 = arith.select %73, %71, %74 : vector<2x8x8xi1>, vector<2x8x8xf32>
    %cst_29 = arith.constant dense<0xFF800000> : vector<2x8xf32>
    %76 = vector.multi_reduction <maximumf>, %75, %cst_29 [2] : vector<2x8x8xf32> to vector<2x8xf32>
    %77 = vector.shape_cast %76 : vector<2x8xf32> to vector<2x8x1xf32>
    %78 = vector.broadcast %77 : vector<2x8x1xf32> to vector<2x8x8xf32>
    %79 = arith.subf %75, %78 : vector<2x8x8xf32>
    %80 = math.exp %79 : vector<2x8x8xf32>
    %cst_30 = arith.constant dense<0.000000e+00> : vector<2x8xf32>
    %81 = vector.multi_reduction <add>, %80, %cst_30 [2] : vector<2x8x8xf32> to vector<2x8xf32>
    %82 = vector.shape_cast %81 : vector<2x8xf32> to vector<2x8x1xf32>
    %83 = tpu.reciprocal %82 : vector<2x8x1xf32> -> vector<2x8x1xf32>
    %84 = vector.broadcast %83 : vector<2x8x1xf32> to vector<2x8x8xf32>
    %85 = arith.mulf %80, %84 : vector<2x8x8xf32>
    "tpu.trace_start"() <{level = 10 : i32, message = "bts,bsd->btd"}> : () -> ()
    %cst_31 = arith.constant dense<0.000000e+00> : vector<2x8x8xf32>
    %86 = tpu.matmul %85, %70, %cst_31 {dimension_numbers = #tpu.dot_dimension_numbers<[2], [1], [1], [2], [0, 0, 0, 1, 1, 2], [0], [0]>} : vector<2x8x8xf32>, vector<2x8x8xf32>, vector<2x8x8xf32> -> vector<2x8x8xf32>
    "tpu.trace_stop"() : () -> ()
    %87 = vector.extract_strided_slice %23 {offsets = [0, 0, 24], sizes = [2, 8, 8], strides = [1, 1, 1]} : vector<2x8x32xf32> to vector<2x8x8xf32>
    %88 = vector.extract_strided_slice %24 {offsets = [0, 0, 24], sizes = [2, 8, 8], strides = [1, 1, 1]} : vector<2x8x32xf32> to vector<2x8x8xf32>
    %89 = vector.extract_strided_slice %25 {offsets = [0, 0, 24], sizes = [2, 8, 8], strides = [1, 1, 1]} : vector<2x8x32xf32> to vector<2x8x8xf32>
    "tpu.trace_start"() <{level = 10 : i32, message = "btd,bsd->bts"}> : () -> ()
    %cst_32 = arith.constant dense<0.000000e+00> : vector<2x8x8xf32>
    %90 = tpu.matmul %87, %88, %cst_32 {dimension_numbers = #tpu.dot_dimension_numbers<[2], [2], [1], [1], [0, 0, 0, 1, 1, 1], [0], [0]>} : vector<2x8x8xf32>, vector<2x8x8xf32>, vector<2x8x8xf32> -> vector<2x8x8xf32>
    %cst_33 = arith.constant -1.000000e+09 : f32
    "tpu.trace_stop"() : () -> ()
    %91 = vector.shape_cast %29 : vector<1x8x8xi1> to vector<1x8x8xi1>
    %92 = vector.broadcast %91 : vector<1x8x8xi1> to vector<2x8x8xi1>
    %93 = vector.broadcast %cst_33 : f32 to vector<2x8x8xf32>
    %94 = arith.select %92, %90, %93 : vector<2x8x8xi1>, vector<2x8x8xf32>
    %cst_34 = arith.constant dense<0xFF800000> : vector<2x8xf32>
    %95 = vector.multi_reduction <maximumf>, %94, %cst_34 [2] : vector<2x8x8xf32> to vector<2x8xf32>
    %96 = vector.shape_cast %95 : vector<2x8xf32> to vector<2x8x1xf32>
    %97 = vector.broadcast %96 : vector<2x8x1xf32> to vector<2x8x8xf32>
    %98 = arith.subf %94, %97 : vector<2x8x8xf32>
    %99 = math.exp %98 : vector<2x8x8xf32>
    %cst_35 = arith.constant dense<0.000000e+00> : vector<2x8xf32>
    %100 = vector.multi_reduction <add>, %99, %cst_35 [2] : vector<2x8x8xf32> to vector<2x8xf32>
    %101 = vector.shape_cast %100 : vector<2x8xf32> to vector<2x8x1xf32>
    %102 = tpu.reciprocal %101 : vector<2x8x1xf32> -> vector<2x8x1xf32>
    %103 = vector.broadcast %102 : vector<2x8x1xf32> to vector<2x8x8xf32>
    %104 = arith.mulf %99, %103 : vector<2x8x8xf32>
    "tpu.trace_start"() <{level = 10 : i32, message = "bts,bsd->btd"}> : () -> ()
    %cst_36 = arith.constant dense<0.000000e+00> : vector<2x8x8xf32>
    %105 = tpu.matmul %104, %89, %cst_36 {dimension_numbers = #tpu.dot_dimension_numbers<[2], [1], [1], [2], [0, 0, 0, 1, 1, 2], [0], [0]>} : vector<2x8x8xf32>, vector<2x8x8xf32>, vector<2x8x8xf32> -> vector<2x8x8xf32>
    "tpu.trace_stop"() : () -> ()
    %106 = tpu.concatenate %48, %67, %86, %105 in 2 : vector<2x8x8xf32>, vector<2x8x8xf32>, vector<2x8x8xf32>, vector<2x8x8xf32> -> vector<2x8x32xf32>
    %107 = vector.shape_cast %106 : vector<2x8x32xf32> to vector<16x32xf32>
    %108 = vector.extract_strided_slice %0 {offsets = [0, 96], sizes = [32, 32], strides = [1, 1]} : vector<32x128xf32> to vector<32x32xf32>
    %cst_37 = arith.constant dense<0.000000e+00> : vector<16x32xf32>
    %109 = tpu.matmul %107, %108, %cst_37 {dimension_numbers = #tpu.dot_dimension_numbers<[1], [0], [0], [1], [0, 0, 1, 1], [], []>} : vector<16x32xf32>, vector<32x32xf32>, vector<16x32xf32> -> vector<16x32xf32>
    %110 = vector.broadcast %4 : vector<1x32xf32> to vector<16x32xf32>
    %111 = arith.addf %109, %110 : vector<16x32xf32>
    %112 = vector.shape_cast %111 : vector<16x32xf32> to vector<2x8x32xf32>
    %c0_38 = arith.constant 0 : index
    %c0_39 = arith.constant 0 : index
    %c0_40 = arith.constant 0 : index
    %113 = vector.load %arg5[%c0_38, %c0_39, %c0_40] : memref<2x8x32xf32, #tpu.memory_space<vmem>>, vector<2x8x32xf32>
    tpu.vector_store %arg5[%c0_38, %c0_39, %c0_40], %112 {strides = array<i32>} : memref<2x8x32xf32, #tpu.memory_space<vmem>>, vector<2x8x32xf32>,
    return
  }
}

</mosaic_0001>

<bundles_post_ra>
// kernel: tpu_custom_call.1
= control target key start
LH: loop header
LB: loop body
LE: loop exit
PB: predicated region body
PF: predicated region fallthrough
CT: control target
= control target key end

     0   :  { %10 = vsyncpa [#allocation3], 0  ;;  %s2530_s0 = inlined_call_operand.hbm [shape: f32[2,8,32], index: 0, kind: input, shape index: {}]   ;;  %s2531_s1 = inlined_call_operand.hbm [shape: f32[2,8,32], index: 1, kind: input, shape index: {}]   ;;  %s2532_s2 = inlined_call_operand.hbm [shape: f32[2,8,32], index: 2, kind: input, shape index: {}]   ;;  %s2533_s3 = inlined_call_operand.hbm [shape: f32[32,128], index: 3, kind: input, shape index: {}]   ;;  %s2534_s4 = inlined_call_operand.vmem [shape: f32[4,32], index: 4, kind: input, shape index: {}]   ;;  %s2535_s5 = inlined_call_operand.hbm [shape: f32[2,8,32], index: 5, kind: output, shape index: {}]  }
   0x1   :  { %11 = vsyncpa [#allocation6], 0 }
   0x2   :  { %12 = vsyncpa [#allocation9], 0 }
   0x3   :  { %13 = vsyncpa [#allocation4], 0  ;;  %s2225_s18 = smov [#allocation5]   ;;  %s2226_s20 = smov [#allocation2]  }
   0x4   :  { %s31_s19 = sshll.u32 %s2225_s18, 4  ;;  %s19_s21 = sshll.u32 %s2226_s20, 4  ;;  %s32_s19 = int_to_ptr.vmem [resolvable:$true] %s31_s19  ;;  %s20_s21 = int_to_ptr.vmem [resolvable:$true] %s19_s21 }
   0x5   :  { %s2125_s22 = scalar_lea.vmem %s32_s19, 256  ;;  %p2130_p1 = scmp.lt.s32.totalorder %s32_s19, %s32_s19 }
   0x6   :  { %p2126_p0 = scmp.ne.s32.totalorder %s32_s19, %s2125_s22  ;;  %p2131_p2 = scmp.lt.s32.totalorder %s2125_s22, %s2125_s22 }
   0x8   :  { %p2132_p3 = por %p2131_p2, %p2130_p1 }
   0xa   :  { %p2133_p4 = pnand %p2132_p3, %p2126_p0 }
   0xc   :  { %2136 = shalt.err (!%p2133_p4)
}
   0xd   :  { %s2227_s23 = smov 128   ;;  %s2228_s24 = smov 8  }
   0xe   :  { %37 = dma.hbm_to_vmem [thread:$0]  %s2531_s1, 256, %s32_s19, [#allocation6], %s2227_s23, %s2227_s23, %s2228_s24  }
   0xf   :  { %s2145_s27 = scalar_lea.vmem %s20_s21, 256  ;;  %p2150_p6 = scmp.lt.s32.totalorder %s20_s21, %s20_s21 }
  0x10   :  { %p2146_p5 = scmp.ne.s32.totalorder %s20_s21, %s2145_s27  ;;  %p2151_p7 = scmp.lt.s32.totalorder %s2145_s27, %s2145_s27 }
  0x12   :  { %p2152_p8 = por %p2151_p7, %p2150_p6 }
  0x14   :  { %p2153_p9 = pnand %p2152_p8, %p2146_p5 }
  0x16   :  { %2156 = shalt.err (!%p2153_p9)
}
  0x17   :  { %25 = dma.hbm_to_vmem [thread:$0]  %s2530_s0, 256, %s20_s21, [#allocation3], %s2227_s23, %s2227_s23, %s2228_s24  }
  0x18   :  { %s2229_s30 = smov [#allocation7]   ;;  %s2230_s7 = smov [#allocation8]  }
  0x19   :  { %s43_s6 = sshll.u32 %s2229_s30, 4  ;;  %s55_s8 = sshll.u32 %s2230_s7, 4  ;;  %s44_s6 = int_to_ptr.vmem [resolvable:$true] %s43_s6  ;;  %s56_s8 = int_to_ptr.vmem [resolvable:$true] %s55_s8 }
  0x1a   :  { %s2165_s1 = scalar_lea.vmem %s44_s6, 256  ;;  %p2170_p11 = scmp.lt.s32.totalorder %s44_s6, %s44_s6 }
  0x1b   :  { %p2166_p10 = scmp.ne.s32.totalorder %s44_s6, %s2165_s1  ;;  %p2171_p12 = scmp.lt.s32.totalorder %s2165_s1, %s2165_s1 }
  0x1d   :  { %p2172_p13 = por %p2171_p12, %p2170_p11 }
  0x1f   :  { %p2173_p0 = pnand %p2172_p13, %p2166_p10 }
  0x21   :  { %2176 = shalt.err (!%p2173_p0)
}
  0x22   :  { %49 = dma.hbm_to_vmem [thread:$0]  %s2532_s2, 256, %s44_s6, [#allocation6], %s2227_s23, %s2227_s23, %s2228_s24  }
  0x23   :  { %s2185_s0 = scalar_lea.vmem %s56_s8, 512  ;;  %p2190_p2 = scmp.lt.s32.totalorder %s56_s8, %s56_s8 }
  0x24   :  { %p2186_p1 = scmp.ne.s32.totalorder %s56_s8, %s2185_s0  ;;  %p2191_p3 = scmp.lt.s32.totalorder %s2185_s0, %s2185_s0 }
  0x26   :  { %p2192_p4 = por %p2191_p3, %p2190_p2 }
  0x28   :  { %p2193_p5 = pnand %p2192_p4, %p2186_p1 }
  0x2a   :  { %2196 = shalt.err (!%p2193_p5)
}
  0x2b   :  { %61 = dma.hbm_to_vmem [thread:$0]  %s2533_s3, 512, %s56_s8, [#allocation9], %s2227_s23, %s2227_s23, %s2228_s24  }
  0x2c   :  { %2217 = dma.done.wait [#allocation3], 256  }
  0x2d   :  { %2218 = vsyncadd [#allocation3], 4294967040 }
  0x2e   :  { %2219 = dma.done.wait [#allocation6], 512  }
  0x2f   :  { %2220 = vsyncadd [#allocation6], 4294966784 }
  0x30   :  { %2221 = dma.done.wait [#allocation9], 512  }
  0x31   :  { %2222 = vsyncadd [#allocation9], 4294966784  ;;  %vm94_vm0 = vcmask 261120   ;;  %v2296_v0 = vld [vmem:[#allocation8 + $0x18] sm:$0xff]  ;;  %v2298_v1 = vld [vmem:[#allocation8 + $0x8] sm:$0xff]  ;;  %s2231_s2 = smov 96   ;;  %v374_v29 = vlaneseq }
  0x32   :  { %190 = vrot.lane.b32.xlu0 %v2296_v0, %s2231_s2  ;;  %186 = vrot.lane.b32.xlu1 %v2298_v1, %s2231_s2  ;;  %v86_v2 = vld [vmem:[#allocation5] sm:$0xff]  ;;  %v2302_v3 = vld [vmem:[#allocation8 + $0x10] sm:$0xff]  ;;  %v85_v6 = vld [vmem:[#allocation2 + $0x8] sm:$0xff]  ;;  %v2232_v12 = vmov 0.0   ;;  %vm2233_vm1 = vmmov 0   ;;  %s2234_s3 = smov 64  }
  0x33   :  { %v2304_v4 = vld [vmem:[#allocation8] sm:$0xff]  ;;  %1944 = vmatprep.subr.mxu0 %v2296_v0  ;;  %1963 = vmatprep.mubr.msk.f32.mxu1 %vm94_vm0, %v86_v2  ;;  %v84_v5 = vld [vmem:[#allocation2] sm:$0xff]  ;;  %v87_v11 = vld [vmem:[#allocation5 + $0x8] sm:$0xff]  ;;  %vm379_vm2 = vcmask 64512   ;;  %v375_v30 = vshrl.u32 %v374_v29, 7  ;;  %v377_v31 = vand.u32 127, %v374_v29 }
  0x34   :  { %1945 = vmatpush3.msra.mxu0 %v2296_v0  ;;  %1952 = vmatprep.mubr.msk.f32.mxu0 %vm94_vm0, %v84_v5  ;;  %v1855_v15 = vld [vmem:[%s2534_s4 + $0x1] ss:$0 sm:$0xff]  ;;  %v1852_v17 = vld [vmem:[%s2534_s4] ss:$0 sm:$0xff]  ;;  %v89_v28 = vld [vmem:[#allocation7 + $0x8] sm:$0xff]  ;;  %s2235_s17 = smov 120  }
  0x35   :  { %1946 = vmatprep.subr.mxu0 %v2302_v3  ;;  %v88_v25 = vld [vmem:[#allocation7] sm:$0xff]  ;;  %vm2360_vm3 = vcmp.ge.s32.totalorder %v375_v30, %v377_v31  ;;  %s2236_s20 = smov 112   ;;  %s2237_s21 = smov 104   ;;  %vm1728_vm4 = vcmask 130048   ;;  %vm1731_vm5 = vcmask 195584  }
  0x36   :  { %188 = vrot.lane.b32.xlu0 %v2302_v3, %s2231_s2  ;;  %184 = vrot.lane.b32.xlu1 %v2304_v4, %s2231_s2  ;;  %v1858_v54 = vld [vmem:[%s2534_s4 + $0x2] ss:$0 sm:$0xff]  ;;  %s2238_s22 = smov 32   ;;  %s2239_s25 = smov 16  }
  0x37   :  { %1947 = vmatpush3.msra.mxu0 %v2302_v3  ;;  %s2240_s26 = smov 24   ;;  %s2241_s29 = smov [#allocation10]  }
  0x38   :  { %1948 = vmatprep.subr.mxu0 %v2298_v1  ;;  %s1838_s30 = sshll.u32 %s2241_s29, 4  ;;  %s1839_s30 = int_to_ptr.vmem [resolvable:$true] %s1838_s30 }
  0x39   :  { %1949 = vmatpush3.msra.mxu0 %v2298_v1  ;;  %s2197_s6 = scalar_lea.vmem %s1839_s30, 256  ;;  %p2202_p7 = scmp.lt.s32.totalorder %s1839_s30, %s1839_s30 }
  0x3a   :  { %1950 = vmatprep.subr.mxu0 %v2304_v4  ;;  %287 = vrot.lane.b32.xlu0 %v2296_v0, %s2234_s3  ;;  %p2198_p6 = scmp.ne.s32.totalorder %s1839_s30, %s2197_s6  ;;  %p2203_p8 = scmp.lt.s32.totalorder %s2197_s6, %s2197_s6 }
  0x3b   :  { %1951 = vmatpush3.msra.mxu0 %v2304_v4  ;;  %285 = vrot.lane.b32.xlu1 %v2302_v3, %s2234_s3 }
  0x3c   :  { %1953 = vmatmul.mubr.msk.f32.vlgmr.msra.gmra.mxu0 %vm94_vm0, %v85_v6  ;;  %p2204_p9 = por %p2203_p8, %p2202_p7 }
  0x3d   :  { %1974 = vmatprep.mubr.msk.f32.mxu0 %vm94_vm0, %v88_v25 }
  0x3e   :  { %283 = vrot.lane.b32.xlu0 %v2298_v1, %s2234_s3  ;;  %p2205_p10 = pnand %p2204_p9, %p2198_p6 }
  0x3f   :  { %281 = vrot.lane.b32.xlu1 %v2304_v4, %s2234_s3 }
  0xa4   :  { %v191_v7 = vpop.permute.xlu0 %190  ;;  %v187_v8 = vpop.permute.xlu1 %186 }
  0xa5   :  { %1955 = vmatprep.subr.mxu1 %v191_v7 }
  0xa6   :  { %1956 = vmatpush3.msra.mxu1 %v191_v7 }
  0xa8   :  { %v189_v9 = vpop.permute.xlu0 %188  ;;  %v185_v10 = vpop.permute.xlu1 %184 }
  0xa9   :  { %1957 = vmatprep.subr.mxu1 %v189_v9 }
  0xaa   :  { %1958 = vmatpush3.msra.mxu1 %v189_v9 }
  0xab   :  { %1959 = vmatprep.subr.mxu1 %v187_v8 }
  0xac   :  { %1960 = vmatpush3.msra.mxu1 %v187_v8  ;;  %v288_v23 = vpop.permute.xlu0 %287 }
  0xad   :  { %1961 = vmatprep.subr.mxu1 %v185_v10  ;;  %v286_v24 = vpop.permute.xlu1 %285  ;;  %1966 = vmatprep.subr.mxu0 %v288_v23 }
  0xae   :  { %1962 = vmatpush3.msra.mxu1 %v185_v10  ;;  %1967 = vmatpush3.msra.mxu0 %v288_v23 }
  0xaf   :  { %1964 = vmatmul.mubr.msk.f32.vlgmr.msra.gmra.mxu1 %vm94_vm0, %v87_v11  ;;  %1977 = vmatprep.subr.mxu1 %v2232_v12 }
  0xb0   :  { %1979 = vmatprep.mubr.msk.f32.mxu1 %vm2233_vm1, %v2232_v12  ;;  %1968 = vmatprep.subr.mxu0 %v286_v24  ;;  %v284_v26 = vpop.permute.xlu0 %283 }
  0xb1   :  { %1969 = vmatpush3.msra.mxu0 %v286_v24  ;;  %v282_v27 = vpop.permute.xlu1 %281 }
  0xb2   :  { %1970 = vmatprep.subr.mxu0 %v284_v26 }
  0xb3   :  { %1971 = vmatpush3.msra.mxu0 %v284_v26 }
  0xb4   :  { %1972 = vmatprep.subr.mxu0 %v282_v27 }
  0xb5   :  { %1973 = vmatpush3.msra.mxu0 %v282_v27 }
  0xb6   :  { %1975 = vmatmul.mubr.msk.f32.vlgmr.msra.gmra.mxu0 %vm94_vm0, %v89_v28  ;;  %1997 = vmatprep.subr.mxu0 %v2232_v12 }
  0xb7   :  { %1999 = vmatprep.mubr.msk.f32.mxu0 %vm2233_vm1, %v2232_v12 }
  0xfc   :  { %v1954_v13 = vpop.f32.mrf.mxu0 }
  0xfd   :  { %v2348_v22 = vadd.f32 %v1954_v13, %v1852_v17 }
  0xfe   :  { %v167_v19 = vpop.f32.mrf.mxu0 }
  0xff   :  { %v2337_v20 = vadd.f32 %v1852_v17, %v167_v19 }
 0x16f   :  { %v1965_v14 = vpop.f32.mrf.mxu1 }
 0x170   :  { %v2340_v21 = vadd.f32 %v1965_v14, %v1855_v15 }
 0x171   :  { %v268_v16 = vpop.f32.mrf.mxu1 }
 0x172   :  { %v2333_v18 = vadd.f32 %v1855_v15, %v268_v16 }
 0x174   :  { %1978 = vmatpush3.xpose.msk.msra.mxu1 %vm379_vm2, %v2333_v18 }
 0x175   :  { %1982 = vmatprep.subr.mxu1 %v2232_v12 }
 0x176   :  { %v1976_v53 = vpop.f32.mrf.mxu0 }
 0x177   :  { %1980 = vmatmul.mubr.msk.f32.vlgmr.msra.gmra.mxu1 %vm379_vm2, %v2337_v20  ;;  %v2386_v55 = vadd.f32 %v1976_v53, %v1858_v54 }
 0x178   :  { %1983 = vmatpush3.xpose.msk.msra.mxu1 %vm379_vm2, %v2340_v21  ;;  %1984 = vmatprep.mubr.msk.f32.mxu1 %vm2233_vm1, %v2232_v12  ;;  %v365_v56 = vpop.f32.mrf.mxu0 }
 0x179   :  { %1987 = vmatprep.subr.mxu1 %v2232_v12  ;;  %v2388_v57 = vadd.f32 %v1858_v54, %v365_v56 }
 0x17b   :  { %1985 = vmatmul.mubr.msk.f32.vlgmr.msra.gmra.mxu1 %vm379_vm2, %v2348_v22 }
 0x17c   :  { %1989 = vmatprep.mubr.msk.f32.mxu1 %vm2233_vm1, %v2232_v12  ;;  %1988 = vmatpush3.msra.mxu1 %v2388_v57 }
 0x17d   :  { %1992 = vmatprep.subr.mxu1 %v2232_v12 }
 0x237   :  { %v452_v33 = vpop.f32.mrf.mxu1 }
 0x238   :  { %v534_v34 = vsel %vm2360_vm3, %v452_v33, -1e+09 }
 0x239   :  { %v1981_v35 = vpop.f32.mrf.mxu1  ;;  %v536_v36 = vsel %vm379_vm2, %v534_v34, -inf }
 0x23a   :  { %537 = vmax.xlane.f32.xlu0 %v536_v36 }
 0x23b   :  { %v528_v37 = vpop.f32.mrf.mxu1 }
 0x23c   :  { %v535_v38 = vsel %vm2360_vm3, %v528_v37, -1e+09 }
 0x23d   :  { %v1986_v39 = vpop.f32.mrf.mxu1  ;;  %v539_v40 = vsel %vm379_vm2, %v535_v38, -inf }
 0x23e   :  { %540 = vmax.xlane.f32.xlu1 %v539_v40 }
 0x24f   :  { %706 = vrot.lane.b32.xlu1 %v2333_v18, %s2235_s17 }
 0x253   :  { %704 = vrot.lane.b32.xlu1 %v2337_v20, %s2235_s17 }
 0x257   :  { %782 = vrot.lane.b32.xlu1 %v2348_v22, %s2235_s17 }
 0x2c3   :  { %v538_v41 = vpop.xlane.xlu0 %537 }
 0x2c4   :  { %v542_v42 = vsub.f32 %v534_v34, %v538_v41 }
 0x2c6   :  { %v544_v43 = vmul.f32 1.442695, %v542_v42 }
 0x2c7   :  { %v541_v44 = vpop.xlane.xlu1 %540 }
 0x2c8   :  { %2085 = vpow2.f32 %v544_v43  ;;  %v543_v45 = vsub.f32 %v535_v38, %v541_v44 }
 0x2ca   :  { %v546_v46 = vmul.f32 1.442695, %v543_v45 }
 0x2cb   :  { %v707_v47 = vpop.permute.xlu1 %706 }
 0x2cc   :  { %2087 = vpow2.f32 %v546_v46  ;;  %1998 = vmatpush3.xpose.msk.msra.mxu0 %vm379_vm2, %v707_v47 }
 0x2cd   :  { %2007 = vmatprep.subr.mxu0 %v2232_v12 }
 0x2cf   :  { %v705_v48 = vpop.permute.xlu1 %704 }
 0x2d0   :  { %2000 = vmatmul.mubr.msk.f32.vlgmr.msra.gmra.mxu0 %vm379_vm2, %v705_v48 }
 0x2d1   :  { %2009 = vmatprep.mubr.msk.f32.mxu0 %vm2233_vm1, %v2232_v12 }
 0x2d3   :  { %v783_v5 = vpop.permute.xlu1 %782 }
 0x2d5   :  { %v2086_v49 = vpop.eup %2085 }
 0x2d6   :  { %v548_v50 = vsel %vm379_vm2, %v2086_v49, 0.0 }
 0x2d7   :  { %549 = vadd.xlane.f32.xlu0 %v548_v50 }
 0x2d9   :  { %v2088_v51 = vpop.eup %2087 }
 0x2da   :  { %v551_v52 = vsel %vm379_vm2, %v2088_v51, 0.0 }
 0x2db   :  { %552 = vadd.xlane.f32.xlu0 %v551_v52 }
 0x2f1   :  { %784 = vrot.lane.b32.xlu0 %v2340_v21, %s2235_s17 }
 0x360   :  { %v550_v58 = vpop.xlane.xlu0 %549 }
 0x361   :  { %2089 = vrcp.f32 %v550_v58 }
 0x364   :  { %v553_v59 = vpop.xlane.xlu0 %552 }
 0x365   :  { %2091 = vrcp.f32 %v553_v59 }
 0x368   :  { %v785_v2 = vpop.permute.xlu0 %784 }
 0x36e   :  { %v2090_v60 = vpop.eup %2089 }
 0x36f   :  { %v556_v61 = vmul.f32 %v2090_v60, %v2086_v49 }
 0x371   :  { %1990 = vmatmul.mubr.msk.f32.vlgmr.msra.gmra.mxu1 %vm379_vm2, %v556_v61 }
 0x372   :  { %v2092_v62 = vpop.eup %2091  ;;  %1993 = vmatpush3.msra.mxu1 %v2386_v55  ;;  %1994 = vmatprep.mubr.msk.f32.mxu1 %vm2233_vm1, %v2232_v12 }
 0x373   :  { %2002 = vmatprep.subr.mxu1 %v2232_v12  ;;  %v557_v63 = vmul.f32 %v2092_v62, %v2088_v51 }
 0x375   :  { %1995 = vmatmul.mubr.msk.f32.vlgmr.msra.gmra.mxu1 %vm379_vm2, %v557_v63 }
 0x376   :  { %2003 = vmatpush3.xpose.msk.msra.mxu1 %vm379_vm2, %v785_v2  ;;  %2004 = vmatprep.mubr.msk.f32.mxu1 %vm2233_vm1, %v2232_v12 }
 0x377   :  { %2012 = vmatprep.subr.mxu1 %v2232_v12 }
 0x379   :  { %2005 = vmatmul.mubr.msk.f32.vlgmr.msra.gmra.mxu1 %vm379_vm2, %v783_v5 }
 0x37a   :  { %2014 = vmatprep.mubr.msk.f32.mxu1 %vm2233_vm1, %v2232_v12 }
 0x390   :  { %v778_v6 = vpop.f32.mrf.mxu0 }
 0x391   :  { %v860_v7 = vsel %vm2360_vm3, %v778_v6, -1e+09 }
 0x392   :  { %v2001_v8 = vpop.f32.mrf.mxu0  ;;  %v862_v9 = vsel %vm379_vm2, %v860_v7, -inf }
 0x393   :  { %863 = vmax.xlane.f32.xlu0 %v862_v9 }
 0x41c   :  { %v864_v10 = vpop.xlane.xlu0 %863 }
 0x41d   :  { %v868_v11 = vsub.f32 %v860_v7, %v864_v10 }
 0x41f   :  { %v870_v13 = vmul.f32 1.442695, %v868_v11 }
 0x421   :  { %2093 = vpow2.f32 %v870_v13 }
 0x42e   :  { %v2094_v14 = vpop.eup %2093 }
 0x42f   :  { %v874_v15 = vsel %vm379_vm2, %v2094_v14, 0.0 }
 0x430   :  { %875 = vadd.xlane.f32.xlu0 %v874_v15 }
 0x431   :  { %v2411_v16 = vpop.f32.mrf.mxu1 }
 0x433   :  { %v1991_v17 = vpop.f32.mrf.mxu1 }
 0x435   :  { %v2413_v19 = vpop.f32.mrf.mxu1 }
 0x437   :  { %v1996_v23 = vpop.f32.mrf.mxu1 }
 0x439   :  { %v856_v24 = vpop.f32.mrf.mxu1 }
 0x43a   :  { %v861_v25 = vsel %vm2360_vm3, %v856_v24, -1e+09 }
 0x43b   :  { %v2006_v26 = vpop.f32.mrf.mxu1  ;;  %v865_v27 = vsel %vm379_vm2, %v861_v25, -inf }
 0x43c   :  { %866 = vmax.xlane.f32.xlu1 %v865_v27 }
 0x446   :  { %962 = vrot.lane.b32.xlu0 %v2386_v55, %s2235_s17 }
 0x44d   :  { %885 = vrot.lane.b32.xlu1 %v2388_v57, %s2235_s17 }
 0x451   :  { %1040 = vrot.lane.b32.xlu1 %v2333_v18, %s2236_s20 }
 0x455   :  { %1118 = vrot.lane.b32.xlu1 %v2340_v21, %s2236_s20 }
 0x459   :  { %1116 = vrot.lane.b32.xlu1 %v2348_v22, %s2236_s20 }
 0x4b9   :  { %v876_v28 = vpop.xlane.xlu0 %875 }
 0x4ba   :  { %2095 = vrcp.f32 %v876_v28 }
 0x4bd   :  { %v963_v29 = vpop.permute.xlu0 %962 }
 0x4be   :  { %2013 = vmatpush3.msra.mxu1 %v963_v29 }
 0x4bf   :  { %2022 = vmatprep.subr.mxu1 %v2232_v12 }
 0x4c5   :  { %v867_v30 = vpop.xlane.xlu1 %866 }
 0x4c6   :  { %v869_v31 = vsub.f32 %v861_v25, %v867_v30 }
 0x4c7   :  { %v2096_v33 = vpop.eup %2095 }
 0x4c8   :  { %v872_v34 = vmul.f32 1.442695, %v869_v31  ;;  %v882_v35 = vmul.f32 %v2096_v33, %v2094_v14 }
 0x4c9   :  { %v886_v36 = vpop.permute.xlu1 %885 }
 0x4ca   :  { %2097 = vpow2.f32 %v872_v34  ;;  %2008 = vmatpush3.msra.mxu0 %v886_v36 }
 0x4cb   :  { %2010 = vmatmul.mubr.msk.f32.vlgmr.msra.gmra.mxu0 %vm379_vm2, %v882_v35  ;;  %2017 = vmatprep.subr.mxu0 %v2232_v12 }
 0x4cc   :  { %2019 = vmatprep.mubr.msk.f32.mxu0 %vm2233_vm1, %v2232_v12 }
 0x4cd   :  { %v1041_v37 = vpop.permute.xlu1 %1040 }
 0x4ce   :  { %2018 = vmatpush3.xpose.msk.msra.mxu0 %vm379_vm2, %v1041_v37 }
 0x4cf   :  { %2027 = vmatprep.subr.mxu0 %v2232_v12 }
 0x4d1   :  { %v1119_v43 = vpop.permute.xlu1 %1118 }
 0x4d5   :  { %v1117_v45 = vpop.permute.xlu1 %1116 }
 0x4d7   :  { %v2098_v38 = vpop.eup %2097 }
 0x4d8   :  { %v877_v39 = vsel %vm379_vm2, %v2098_v38, 0.0 }
 0x4d9   :  { %878 = vadd.xlane.f32.xlu0 %v877_v39 }
 0x4ef   :  { %1038 = vrot.lane.b32.xlu0 %v2337_v20, %s2236_s20 }
 0x562   :  { %v879_v40 = vpop.xlane.xlu0 %878 }
 0x563   :  { %2099 = vrcp.f32 %v879_v40 }
 0x566   :  { %v1039_v41 = vpop.permute.xlu0 %1038 }
 0x567   :  { %2020 = vmatmul.mubr.msk.f32.vlgmr.msra.gmra.mxu0 %vm379_vm2, %v1039_v41 }
 0x568   :  { %2029 = vmatprep.mubr.msk.f32.mxu0 %vm2233_vm1, %v2232_v12 }
 0x570   :  { %v2100_v42 = vpop.eup %2099 }
 0x571   :  { %v883_v44 = vmul.f32 %v2100_v42, %v2098_v38 }
 0x573   :  { %2015 = vmatmul.mubr.msk.f32.vlgmr.msra.gmra.mxu1 %vm379_vm2, %v883_v44 }
 0x574   :  { %2023 = vmatpush3.xpose.msk.msra.mxu1 %vm379_vm2, %v1119_v43  ;;  %2024 = vmatprep.mubr.msk.f32.mxu1 %vm2233_vm1, %v2232_v12 }
 0x575   :  { %2032 = vmatprep.subr.mxu1 %v2232_v12 }
 0x577   :  { %2025 = vmatmul.mubr.msk.f32.vlgmr.msra.gmra.mxu1 %vm379_vm2, %v1117_v45 }
 0x578   :  { %2034 = vmatprep.mubr.msk.f32.mxu1 %vm2233_vm1, %v2232_v12 }
 0x58b   :  { %v2449_v46 = vpop.f32.mrf.mxu0 }
 0x58d   :  { %v2011_v47 = vpop.f32.mrf.mxu0 }
 0x627   :  { %v1112_v48 = vpop.f32.mrf.mxu0 }
 0x628   :  { %v1194_v49 = vsel %vm2360_vm3, %v1112_v48, -1e+09 }
 0x629   :  { %v2021_v50 = vpop.f32.mrf.mxu0  ;;  %v1196_v51 = vsel %vm379_vm2, %v1194_v49, -inf }
 0x62a   :  { %1197 = vmax.xlane.f32.xlu0 %v1196_v51 }
 0x633   :  { %v2454_v52 = vpop.f32.mrf.mxu1 }
 0x635   :  { %v2016_v53 = vpop.f32.mrf.mxu1 }
 0x637   :  { %v1190_v54 = vpop.f32.mrf.mxu1 }
 0x638   :  { %v1195_v56 = vsel %vm2360_vm3, %v1190_v54, -1e+09 }
 0x639   :  { %v2026_v58 = vpop.f32.mrf.mxu1  ;;  %v1199_v59 = vsel %vm379_vm2, %v1195_v56, -inf }
 0x63a   :  { %1200 = vmax.xlane.f32.xlu1 %v1199_v59 }
 0x64b   :  { %1218 = vrot.lane.b32.xlu1 %v2388_v57, %s2236_s20 }
 0x64f   :  { %1372 = vrot.lane.b32.xlu1 %v2333_v18, %s2237_s21 }
 0x653   :  { %1450 = vrot.lane.b32.xlu1 %v2340_v21, %s2237_s21 }
 0x657   :  { %1448 = vrot.lane.b32.xlu1 %v2348_v22, %s2237_s21 }
 0x6b3   :  { %v1198_v60 = vpop.xlane.xlu0 %1197 }
 0x6b4   :  { %v1202_v61 = vsub.f32 %v1194_v49, %v1198_v60 }
 0x6b6   :  { %v1204_v62 = vmul.f32 1.442695, %v1202_v61 }
 0x6b8   :  { %2101 = vpow2.f32 %v1204_v62 }
 0x6c3   :  { %v1201_v63 = vpop.xlane.xlu1 %1200 }
 0x6c4   :  { %v1203_v18 = vsub.f32 %v1195_v56, %v1201_v63 }
 0x6c5   :  { %v2102_v2 = vpop.eup %2101 }
 0x6c6   :  { %v1208_v5 = vsel %vm379_vm2, %v2102_v2, 0.0  ;;  %v1206_v21 = vmul.f32 1.442695, %v1203_v18 }
 0x6c7   :  { %1209 = vadd.xlane.f32.xlu0 %v1208_v5  ;;  %v1219_v6 = vpop.permute.xlu1 %1218 }
 0x6c8   :  { %2028 = vmatpush3.msra.mxu0 %v1219_v6  ;;  %2103 = vpow2.f32 %v1206_v21 }
 0x6c9   :  { %2037 = vmatprep.subr.mxu0 %v2232_v12 }
 0x6cb   :  { %v1373_v13 = vpop.permute.xlu1 %1372 }
 0x6cf   :  { %v1451_v17 = vpop.permute.xlu1 %1450 }
 0x6d3   :  { %v1449_v24 = vpop.permute.xlu1 %1448 }
 0x6d5   :  { %v2104_v22 = vpop.eup %2103 }
 0x6d6   :  { %v1211_v7 = vsel %vm379_vm2, %v2104_v22, 0.0 }
 0x6dd   :  { %1294 = vrot.lane.b32.xlu0 %v2386_v55, %s2236_s20 }
 0x6fc   :  { %1212 = vadd.xlane.f32.xlu0 %v1211_v7  ;;  %v1885_v7 = vld [vmem:[%s2534_s4 + $0x3] ss:$0 sm:$0xff] }
 0x712   :  { %1370 = vrot.lane.b32.xlu0 %v2337_v20, %s2237_s21 }
 0x750   :  { %v1210_v8 = vpop.xlane.xlu0 %1209 }
 0x751   :  { %2105 = vrcp.f32 %v1210_v8 }
 0x754   :  { %v1295_v9 = vpop.permute.xlu0 %1294 }
 0x755   :  { %2033 = vmatpush3.msra.mxu1 %v1295_v9 }
 0x756   :  { %2042 = vmatprep.subr.mxu1 %v2232_v12 }
 0x75e   :  { %v2106_v10 = vpop.eup %2105 }
 0x75f   :  { %v1216_v11 = vmul.f32 %v2106_v10, %v2102_v2 }
 0x761   :  { %2030 = vmatmul.mubr.msk.f32.vlgmr.msra.gmra.mxu0 %vm379_vm2, %v1216_v11 }
 0x762   :  { %2038 = vmatpush3.xpose.msk.msra.mxu0 %vm379_vm2, %v1373_v13  ;;  %2039 = vmatprep.mubr.msk.f32.mxu0 %vm2233_vm1, %v2232_v12 }
 0x763   :  { %2047 = vmatprep.subr.mxu0 %v2232_v12 }
 0x785   :  { %v1213_v14 = vpop.xlane.xlu0 %1212 }
 0x786   :  { %2107 = vrcp.f32 %v1213_v14 }
 0x789   :  { %v1371_v20 = vpop.permute.xlu0 %1370 }
 0x78a   :  { %2040 = vmatmul.mubr.msk.f32.vlgmr.msra.gmra.mxu0 %vm379_vm2, %v1371_v20 }
 0x78b   :  { %2049 = vmatprep.mubr.msk.f32.mxu0 %vm2233_vm1, %v2232_v12 }
 0x793   :  { %v2108_v15 = vpop.eup %2107 }
 0x794   :  { %v1217_v23 = vmul.f32 %v2108_v15, %v2104_v22 }
 0x796   :  { %2035 = vmatmul.mubr.msk.f32.vlgmr.msra.gmra.mxu1 %vm379_vm2, %v1217_v23 }
 0x797   :  { %2043 = vmatpush3.xpose.msk.msra.mxu1 %vm379_vm2, %v1451_v17  ;;  %2044 = vmatprep.mubr.msk.f32.mxu1 %vm2233_vm1, %v2232_v12 }
 0x798   :  { %2052 = vmatprep.subr.mxu1 %v2232_v12 }
 0x79a   :  { %2045 = vmatmul.mubr.msk.f32.vlgmr.msra.gmra.mxu1 %vm379_vm2, %v1449_v24 }
 0x79b   :  { %2054 = vmatprep.mubr.msk.f32.mxu1 %vm2233_vm1, %v2232_v12 }
 0x821   :  { %v1290_v25 = vpop.f32.mrf.mxu0 }
 0x823   :  { %v2031_v26 = vpop.f32.mrf.mxu0 }
 0x84a   :  { %v1444_v27 = vpop.f32.mrf.mxu0 }
 0x84b   :  { %v1526_v28 = vsel %vm2360_vm3, %v1444_v27, -1e+09 }
 0x84c   :  { %v2041_v29 = vpop.f32.mrf.mxu0  ;;  %v1528_v30 = vsel %vm379_vm2, %v1526_v28, -inf }
 0x84d   :  { %1529 = vmax.xlane.f32.xlu0 %v1528_v30 }
 0x856   :  { %v1366_v31 = vpop.f32.mrf.mxu1 }
 0x858   :  { %v2036_v33 = vpop.f32.mrf.mxu1 }
 0x85a   :  { %v1522_v34 = vpop.f32.mrf.mxu1 }
 0x85b   :  { %v1527_v35 = vsel %vm2360_vm3, %v1522_v34, -1e+09 }
 0x85c   :  { %v2046_v36 = vpop.f32.mrf.mxu1  ;;  %v1531_v37 = vsel %vm379_vm2, %v1527_v35, -inf }
 0x85d   :  { %1532 = vmax.xlane.f32.xlu1 %v1531_v37 }
 0x86e   :  { %1550 = vrot.lane.b32.xlu1 %v2388_v57, %s2237_s21 }
 0x872   :  { %1744 = vrot.lane.b32.xlu1 %v2296_v0, %s2238_s22 }
 0x876   :  { %1742 = vrot.lane.b32.xlu1 %v2302_v3, %s2238_s22 }
 0x87a   :  { %1740 = vrot.lane.b32.xlu1 %v2298_v1, %s2238_s22 }
 0x87e   :  { %1712 = vrot.lane.b32.xlu1 %v1290_v25, %s2239_s25 }
 0x8d6   :  { %v1530_v12 = vpop.xlane.xlu0 %1529 }
 0x8d7   :  { %v1534_v38 = vsub.f32 %v1526_v28, %v1530_v12 }
 0x8d9   :  { %v1536_v32 = vmul.f32 1.442695, %v1534_v38 }
 0x8db   :  { %2109 = vpow2.f32 %v1536_v32 }
 0x8e6   :  { %v1533_v39 = vpop.xlane.xlu1 %1532 }
 0x8e7   :  { %v1535_v40 = vsub.f32 %v1527_v35, %v1533_v39 }
 0x8e8   :  { %v2110_v41 = vpop.eup %2109 }
 0x8e9   :  { %v1538_v42 = vmul.f32 1.442695, %v1535_v40  ;;  %v1540_v43 = vsel %vm379_vm2, %v2110_v41, 0.0 }
 0x8ea   :  { %1541 = vadd.xlane.f32.xlu0 %v1540_v43  ;;  %v1551_v57 = vpop.permute.xlu1 %1550 }
 0x8eb   :  { %2111 = vpow2.f32 %v1538_v42  ;;  %2048 = vmatpush3.msra.mxu0 %v1551_v57 }
 0x8ee   :  { %v1745_v0 = vpop.permute.xlu1 %1744 }
 0x8ef   :  { %2057 = vmatprep.subr.mxu0 %v1745_v0 }
 0x8f2   :  { %v1743_v47 = vpop.permute.xlu1 %1742 }
 0x8f8   :  { %v2112_v3 = vpop.eup %2111 }
 0x8f9   :  { %v1543_v1 = vsel %vm379_vm2, %v2112_v3, 0.0 }
 0x8fa   :  { %1544 = vadd.xlane.f32.xlu0 %v1543_v1 }
 0x910   :  { %1626 = vrot.lane.b32.xlu0 %v2386_v55, %s2237_s21  ;;  %v1741_v55 = vpop.permute.xlu1 %1740 }
 0x914   :  { %1704 = vrot.lane.b32.xlu0 %v2449_v46, %s2228_s24  ;;  %v1713_v61 = vpop.permute.xlu1 %1712 }
 0x918   :  { %1706 = vrot.lane.b32.xlu0 %v2454_v52, %s2228_s24 }
 0x91c   :  { %1714 = vrot.lane.b32.xlu0 %v1366_v31, %s2239_s25 }
 0x920   :  { %1738 = vrot.lane.b32.xlu0 %v2304_v4, %s2238_s22 }
 0x973   :  { %v1542_v44 = vpop.xlane.xlu0 %1541 }
 0x974   :  { %2113 = vrcp.f32 %v1542_v44 }
 0x981   :  { %v2114_v45 = vpop.eup %2113 }
 0x982   :  { %v1548_v48 = vmul.f32 %v2114_v45, %v2110_v41 }
 0x983   :  { %v1545_v49 = vpop.xlane.xlu0 %1544 }
 0x984   :  { %2115 = vrcp.f32 %v1545_v49  ;;  %2050 = vmatmul.mubr.msk.f32.vlgmr.msra.gmra.mxu0 %vm379_vm2, %v1548_v48 }
 0x985   :  { %2058 = vmatpush3.msra.mxu0 %v1745_v0 }
 0x986   :  { %2059 = vmatprep.subr.mxu0 %v1743_v47 }
 0x987   :  { %v1627_v50 = vpop.permute.xlu0 %1626  ;;  %2060 = vmatpush3.msra.mxu0 %v1743_v47 }
 0x988   :  { %2053 = vmatpush3.msra.mxu1 %v1627_v50  ;;  %2061 = vmatprep.subr.mxu0 %v1741_v55 }
 0x989   :  { %2062 = vmatpush3.msra.mxu0 %v1741_v55 }
 0x98b   :  { %v1705_v4 = vpop.permute.xlu0 %1704 }
 0x98c   :  { %v1726_v62 = vsel %vm379_vm2, %v2411_v16, %v1705_v4 }
 0x98d   :  { %v1729_v63 = vsel %vm1728_vm4, %v1726_v62, %v1713_v61 }
 0x98f   :  { %v1707_v52 = vpop.permute.xlu0 %1706 }
 0x990   :  { %v1727_v6 = vsel %vm379_vm2, %v2413_v19, %v1707_v52 }
 0x991   :  { %v2116_v46 = vpop.eup %2115 }
 0x992   :  { %v1549_v51 = vmul.f32 %v2116_v46, %v2112_v3 }
 0x993   :  { %v1715_v53 = vpop.permute.xlu0 %1714 }
 0x994   :  { %2055 = vmatmul.mubr.msk.f32.vlgmr.msra.gmra.mxu1 %vm379_vm2, %v1549_v51  ;;  %v1730_v18 = vsel %vm1728_vm4, %v1727_v6, %v1715_v53 }
 0x997   :  { %v1739_v54 = vpop.permute.xlu0 %1738 }
 0x998   :  { %2063 = vmatprep.subr.mxu0 %v1739_v54 }
 0x999   :  { %2064 = vmatpush3.msra.mxu0 %v1739_v54 }
 0xa44   :  { %v1622_v56 = vpop.f32.mrf.mxu0 }
 0xa45   :  { %1720 = vrot.lane.b32.xlu1 %v1622_v56, %s2240_s26 }
 0xa46   :  { %v2051_v58 = vpop.f32.mrf.mxu0 }
 0xa54   :  { %v1698_v59 = vpop.f32.mrf.mxu1 }
 0xa55   :  { %1722 = vrot.lane.b32.xlu1 %v1698_v59, %s2240_s26 }
 0xa56   :  { %v2056_v60 = vpop.f32.mrf.mxu1 }
 0xab7   :  { %v1721_v2 = vpop.permute.xlu1 %1720 }
 0xab8   :  { %v1732_v5 = vsel %vm1731_vm5, %v1729_v63, %v1721_v2 }
 0xab9   :  { %2065 = vmatprep.mubr.msk.f32.mxu0 %vm94_vm0, %v1732_v5 }
 0xac7   :  { %v1723_v21 = vpop.permute.xlu1 %1722 }
 0xac8   :  { %v1733_v22 = vsel %vm1731_vm5, %v1730_v18, %v1723_v21 }
 0xac9   :  { %2066 = vmatmul.mubr.msk.f32.vlgmr.msra.gmra.mxu0 %vm94_vm0, %v1733_v22 }
 0xb89   :  { %v2067_v16 = vpop.f32.mrf.mxu0 }
 0xb8a   :  { %v1828_v8 = vadd.f32 %v2067_v16, %v1885_v7 }
 0xb8b   :  { %v1822_v9 = vpop.f32.mrf.mxu0 }
 0xb8c   :  { %1832 = vst.msk [vmem:[#allocation10 + $0x8] sm:$0xff] %vm94_vm0, %v1828_v8  ;;  %v1823_v10 = vadd.f32 %v1885_v7, %v1822_v9 }
 0xb8e   :  { %1831 = vst.msk [vmem:[#allocation10] sm:$0xff] %vm94_vm0, %v1823_v10 }
 0xb8f   :  { %2208 = shalt.err (!%p2205_p10)
}
 0xb90   :  { %1844 = dma.vmem_to_hbm [thread:$0]  %s1839_s30, 256, %s2535_s5, [#allocation4], %s2227_s23, %s2227_s23, %s2228_s24  }
 0xb91   :  { %2223 = dma.done.wait [#allocation4], 256  }
 0xb92   :  { %2224 = vsyncadd [#allocation4], 4294967040 }
 0xb93   :  { %1848 = vsyncpa [#allocation3], 1 }
 0xb94   :  { %1849 = vsyncpa [#allocation6], 1 }
 0xb95   :  { %1850 = vsyncpa [#allocation9], 1 }
 0xb96   :  { %1851 = vsyncpa [#allocation4], 1 }

</bundles_post_ra>
